<compile_context>
chip_gen: v6e
topology: v6e:2x2x1
jax: 0.10.0
libtpu: 0.0.40
codegen_flags: <defaults>
</compile_context>

<pallas_src>
import functools

import jax
import jax.numpy as jnp
from jax.experimental import pallas as pl
from jax.experimental.pallas import tpu as pltpu

LANE = 128
SUBLANE = 8
_NEG_BIG = -1e30  # padded class columns: exp(-1e30 - m) == 0 in the softmax


def _round_up(x, m):
    return ((x + m - 1) // m) * m


def cnn_kernel(x_ref, wc_ref, bc_ref, wl_ref, bl_ref, o_ref, *,
               block_b, lp, out_l, ksize):
    """Fused conv (K shifted matmuls) + time max-pool + bias/ReLU + linear + log_softmax.

    x_ref : (block_b*lp, D_pad)    bf16  zero-time-padded embedded rows (single copy)
    wc_ref: (ksize, D_pad, F_pad)  bf16  conv weight, one (D_pad, F_pad) slab per tap
    bc_ref: (1, F_pad)             f32   conv bias (0 in padded filter columns)
    wl_ref: (F_pad, C_pad)         bf16  classifier weight (0 in padded rows/cols)
    bl_ref: (1, C_pad)             f32   classifier bias (-1e30 in padded class cols)
    o_ref : (block_b, C_pad)       f32   log-probs (padded class cols ~ -inf)
    """
    f_pad = wc_ref.shape[-1]
    x = x_ref[...]                                        # (block_b*lp, D_pad) bf16

    # Conv1d(kernel=K, padding=1) without im2col duplication: one MXU matmul per
    # tap against the single padded activation copy; outputs shifted & summed.
    acc = None
    for k in range(ksize):                                # static, unrolled
        yk = jnp.dot(x, wc_ref[k], preferred_element_type=jnp.float32)
        yk = yk.reshape(block_b, lp, f_pad)               # lp % 8 == 0 -> layout preserving
        yk = yk[:, k:k + out_l, :]                        # align tap-k output to time t
        acc = yk if acc is None else acc + yk             # (block_b, out_l, F_pad) f32

    # max_t ReLU(conv_t + b) == ReLU(max_t conv_t + b): pool first (smaller work).
    pooled = jnp.max(acc, axis=1)                         # (block_b, F_pad)
    pooled = jnp.maximum(pooled + bc_ref[...], 0.0)       # bias + ReLU

    logits = (jnp.dot(pooled.astype(jnp.bfloat16), wl_ref[...],
                      preferred_element_type=jnp.float32) + bl_ref[...])
    m = jnp.max(logits, axis=1, keepdims=True)
    lse = m + jnp.log(jnp.sum(jnp.exp(logits - m), axis=1, keepdims=True))
    o_ref[...] = logits - lse


def cnn_forward(token_ids, emb_table, w_conv, b_conv, w_lin, b_lin, padding=1):
    """token_ids: (B, L) int32. Returns (B, num_class) log-probs (float32)."""
    B, L = token_ids.shape
    V, D = emb_table.shape
    F, _, K = w_conv.shape
    C = w_lin.shape[0]

    D_pad = _round_up(D, LANE)
    F_pad = _round_up(F, LANE)
    C_pad = _round_up(C, LANE)
    Lp = _round_up(L + 2 * padding, SUBLANE)       # padded, 8-aligned time axis

    # --- row-tile selection ---------------------------------------------------
    ROWS_TARGET = 4096                              # ~1 MiB bf16 activation block
    block_b = max(SUBLANE, (ROWS_TARGET // Lp) // SUBLANE * SUBLANE)
    # keep >= 2 grid tiles when the batch allows so both v7x TensorCores get work
    half_b = _round_up(-(-B // 2), SUBLANE)
    block_b = min(block_b, half_b)
    if block_b >= B:
        block_b = B                                 # single step, full-array block
    B_pad = _round_up(B, block_b)
    num_tiles = B_pad // block_b

    # --- glue: single gather straight into the padded bf16 slab ---------------
    # A zero "pad token" row is appended to the lane-padded bf16 table, and the
    # time/batch padding is expressed as pad-token ids, so the gather emits the
    # padded bf16 activations in one pass (no separate pad / cast / concat).
    # TODO(synk): for very large vocabularies, move this gather in-kernel via
    # PrefetchScalarGridSpec scalar-prefetched token ids + DMA from pl.ANY.
    table = jnp.pad(emb_table, ((0, 1), (0, D_pad - D))).astype(jnp.bfloat16)
    pad_id = V
    ids = jnp.pad(token_ids, ((0, B_pad - B), (padding, Lp - L - padding)),
                  constant_values=pad_id)                              # (B_pad, Lp)
    x_rows = jnp.take(table, ids, axis=0).reshape(B_pad * Lp, D_pad)   # bf16

    # --- weight prep (lane-dense, padded to 128) ------------------------------
    wc = jnp.transpose(w_conv, (2, 1, 0))                              # (K, D, F)
    wc = jnp.pad(wc, ((0, 0), (0, D_pad - D), (0, F_pad - F))).astype(jnp.bfloat16)
    bc = jnp.pad(b_conv.astype(jnp.float32), (0, F_pad - F)).reshape(1, F_pad)
    wl = jnp.pad(w_lin.T, ((0, F_pad - F), (0, C_pad - C))).astype(jnp.bfloat16)
    bl = jnp.concatenate(
        [b_lin.astype(jnp.float32),
         jnp.full((C_pad - C,), _NEG_BIG, jnp.float32)]).reshape(1, C_pad)

    kernel = functools.partial(cnn_kernel, block_b=block_b, lp=Lp,
                               out_l=L, ksize=K)

    grid_spec = pltpu.PrefetchScalarGridSpec(
        num_scalar_prefetch=0,
        grid=(num_tiles,),
        in_specs=[
            pl.BlockSpec((block_b * Lp, D_pad), lambda i: (i, 0)),     # activations
            pl.BlockSpec((K, D_pad, F_pad), lambda i: (0, 0, 0)),      # conv weight
            pl.BlockSpec((1, F_pad), lambda i: (0, 0)),                # conv bias
            pl.BlockSpec((F_pad, C_pad), lambda i: (0, 0)),            # linear weight
            pl.BlockSpec((1, C_pad), lambda i: (0, 0)),                # linear bias
        ],
        out_specs=pl.BlockSpec((block_b, C_pad), lambda i: (i, 0)),
    )

    out_padded = pl.pallas_call(
        kernel,
        out_shape=jax.ShapeDtypeStruct((B_pad, C_pad), jnp.float32),
        grid_spec=grid_spec,
        compiler_params=pltpu.CompilerParams(
            dimension_semantics=("parallel",),
            vmem_limit_bytes=32 * 1024 * 1024),   # raises v5e's 16 MiB default
    )(x_rows, wc, bc, wl, bl)

    return out_padded[:B, :C]


def reference_forward(token_ids, emb_table, w_conv, b_conv, w_lin, b_lin,
                      padding=1):
    """Pure-JAX f32 reference mirroring the PyTorch forward."""
    embedded = jnp.take(emb_table, token_ids, axis=0)                  # (B, L, D)
    x_pad = jnp.pad(embedded, ((0, 0), (padding, padding), (0, 0)))
    B, Lp, D = x_pad.shape
    F, _, K = w_conv.shape
    L = Lp - (K - 1)
    conv = jnp.zeros((B, L, F), jnp.float32)
    for k in range(K):
        conv = conv + jnp.einsum("bld,fd->blf", x_pad[:, k:k + L, :],
                                 w_conv[:, :, k])
    conv = jnp.maximum(conv + b_conv[None, None, :], 0.0)
    pooled = jnp.max(conv, axis=1)                                     # (B, F)
    logits = pooled @ w_lin.T + b_lin[None, :]                         # (B, C)
    return jax.nn.log_softmax(logits, axis=1)


if __name__ == "__main__":
    # Small, module-consistent shapes.
    vocab_size = 50
    embedding_dim = 128
    filter_size = 3
    num_filter = 100
    num_class = 2
    batch = 2
    seq_len = 8

    key = jax.random.PRNGKey(0)
    k_emb, k_wc, k_bc, k_wl, k_bl, k_tok = jax.random.split(key, 6)

    emb_table = jax.random.normal(k_emb, (vocab_size, embedding_dim),
                                  jnp.float32) * 0.1
    # PyTorch Conv1d weight layout: (num_filter, embedding_dim, filter_size)
    w_conv = jax.random.normal(k_wc, (num_filter, embedding_dim, filter_size),
                               jnp.float32) * 0.05
    b_conv = jax.random.normal(k_bc, (num_filter,), jnp.float32) * 0.05
    # PyTorch Linear weight layout: (num_class, num_filter)
    w_lin = jax.random.normal(k_wl, (num_class, num_filter),
                              jnp.float32) * 0.05
    b_lin = jax.random.normal(k_bl, (num_class,), jnp.float32) * 0.05

    token_ids = jax.random.randint(k_tok, (batch, seq_len), 0, vocab_size,
                                   dtype=jnp.int32)

    out = cnn_forward(token_ids, emb_table, w_conv, b_conv, w_lin, b_lin,
                      padding=1)
    out = jax.block_until_ready(out)

    ref = reference_forward(token_ids, emb_table, w_conv, b_conv, w_lin, b_lin,
                            padding=1)
    ref = jax.block_until_ready(ref)

    assert out.shape == (batch, num_class)
    # Tolerance covers bf16 MXU operands in the kernel vs. the pure-f32 reference.
    assert jnp.allclose(out, ref, atol=1e-2, rtol=1e-2), (out, ref)
    print("KERNEL_OK")
</pallas_src>

<mosaic_0001>
module attributes {stable_mosaic.version = 11 : i64} {
  func.func @cnn_kernel(%arg0: i32, %arg1: memref<32x128xbf16, #tpu.memory_space<vmem>>, %arg2: memref<3x128x128xbf16, #tpu.memory_space<vmem>>, %arg3: memref<1x128xf32, #tpu.memory_space<vmem>>, %arg4: memref<128x128xbf16, #tpu.memory_space<vmem>>, %arg5: memref<1x128xf32, #tpu.memory_space<vmem>>, %arg6: memref<2x128xf32, #tpu.memory_space<vmem>>) attributes {dimension_semantics = [#tpu.dimension_semantics<parallel>], iteration_bounds = array<i64: 1>, scalar_prefetch = 0 : i64, scratch_operands = 0 : i64, tpu.core_type = #tpu.core_type<tc>, window_params = [{transform_indices = @transform_0, window_bounds = array<i64: 32, 128>}, {pipeline_mode = #tpu.pipeline_mode<synchronous>, transform_indices = @transform_1, window_bounds = array<i64: 3, 128, 128>}, {pipeline_mode = #tpu.pipeline_mode<synchronous>, transform_indices = @transform_2, window_bounds = array<i64: 1, 128>}, {pipeline_mode = #tpu.pipeline_mode<synchronous>, transform_indices = @transform_3, window_bounds = array<i64: 128, 128>}, {pipeline_mode = #tpu.pipeline_mode<synchronous>, transform_indices = @transform_4, window_bounds = array<i64: 1, 128>}, {transform_indices = @transform_5, window_bounds = array<i64: 2, 128>}]} {
    %c0 = arith.constant 0 : index
    %c0_0 = arith.constant 0 : index
    %0 = vector.load %arg1[%c0, %c0_0] : memref<32x128xbf16, #tpu.memory_space<vmem>>, vector<32x128xbf16>
    %c0_1 = arith.constant 0 : index
    %c0_2 = arith.constant 0 : index
    %c0_3 = arith.constant 0 : index
    %1 = vector.load %arg2[%c0_1, %c0_2, %c0_3] : memref<3x128x128xbf16, #tpu.memory_space<vmem>>, vector<1x128x128xbf16>
    %2 = vector.shape_cast %1 : vector<1x128x128xbf16> to vector<128x128xbf16>
    %cst = arith.constant dense<0.000000e+00> : vector<32x128xf32>
    %3 = tpu.matmul %0, %2, %cst {dimension_numbers = #tpu.dot_dimension_numbers<[1], [0], [0], [1], [0, 0, 1, 1], [], []>} : vector<32x128xbf16>, vector<128x128xbf16>, vector<32x128xf32> -> vector<32x128xf32>
    %4 = vector.shape_cast %3 : vector<32x128xf32> to vector<2x16x128xf32>
    %5 = vector.extract_strided_slice %4 {offsets = [0, 0, 0], sizes = [2, 8, 128], strides = [1, 1, 1]} : vector<2x16x128xf32> to vector<2x8x128xf32>
    %c1 = arith.constant 1 : index
    %c0_4 = arith.constant 0 : index
    %c0_5 = arith.constant 0 : index
    %6 = vector.load %arg2[%c1, %c0_4, %c0_5] : memref<3x128x128xbf16, #tpu.memory_space<vmem>>, vector<1x128x128xbf16>
    %7 = vector.shape_cast %6 : vector<1x128x128xbf16> to vector<128x128xbf16>
    %cst_6 = arith.constant dense<0.000000e+00> : vector<32x128xf32>
    %8 = tpu.matmul %0, %7, %cst_6 {dimension_numbers = #tpu.dot_dimension_numbers<[1], [0], [0], [1], [0, 0, 1, 1], [], []>} : vector<32x128xbf16>, vector<128x128xbf16>, vector<32x128xf32> -> vector<32x128xf32>
    %9 = vector.shape_cast %8 : vector<32x128xf32> to vector<2x16x128xf32>
    %10 = vector.extract_strided_slice %9 {offsets = [0, 1, 0], sizes = [2, 8, 128], strides = [1, 1, 1]} : vector<2x16x128xf32> to vector<2x8x128xf32>
    %11 = arith.addf %5, %10 : vector<2x8x128xf32>
    %c2 = arith.constant 2 : index
    %c0_7 = arith.constant 0 : index
    %c0_8 = arith.constant 0 : index
    %12 = vector.load %arg2[%c2, %c0_7, %c0_8] : memref<3x128x128xbf16, #tpu.memory_space<vmem>>, vector<1x128x128xbf16>
    %13 = vector.shape_cast %12 : vector<1x128x128xbf16> to vector<128x128xbf16>
    %cst_9 = arith.constant dense<0.000000e+00> : vector<32x128xf32>
    %14 = tpu.matmul %0, %13, %cst_9 {dimension_numbers = #tpu.dot_dimension_numbers<[1], [0], [0], [1], [0, 0, 1, 1], [], []>} : vector<32x128xbf16>, vector<128x128xbf16>, vector<32x128xf32> -> vector<32x128xf32>
    %15 = vector.shape_cast %14 : vector<32x128xf32> to vector<2x16x128xf32>
    %16 = vector.extract_strided_slice %15 {offsets = [0, 2, 0], sizes = [2, 8, 128], strides = [1, 1, 1]} : vector<2x16x128xf32> to vector<2x8x128xf32>
    %17 = arith.addf %11, %16 : vector<2x8x128xf32>
    %cst_10 = arith.constant dense<0xFF800000> : vector<2x128xf32>
    %18 = vector.multi_reduction <maximumf>, %17, %cst_10 [1] : vector<2x8x128xf32> to vector<2x128xf32>
    %c0_11 = arith.constant 0 : index
    %c0_12 = arith.constant 0 : index
    %19 = vector.load %arg3[%c0_11, %c0_12] : memref<1x128xf32, #tpu.memory_space<vmem>>, vector<1x128xf32>
    %20 = vector.broadcast %19 : vector<1x128xf32> to vector<2x128xf32>
    %21 = arith.addf %18, %20 : vector<2x128xf32>
    %cst_13 = arith.constant 0.000000e+00 : f32
    %22 = vector.broadcast %cst_13 : f32 to vector<2x128xf32>
    %23 = arith.maximumf %21, %22 : vector<2x128xf32>
    %24 = arith.truncf %23 : vector<2x128xf32> to vector<2x128xbf16>
    %c0_14 = arith.constant 0 : index
    %c0_15 = arith.constant 0 : index
    %25 = vector.load %arg4[%c0_14, %c0_15] : memref<128x128xbf16, #tpu.memory_space<vmem>>, vector<128x128xbf16>
    %cst_16 = arith.constant dense<0.000000e+00> : vector<2x128xf32>
    %26 = tpu.matmul %24, %25, %cst_16 {dimension_numbers = #tpu.dot_dimension_numbers<[1], [0], [0], [1], [0, 0, 1, 1], [], []>} : vector<2x128xbf16>, vector<128x128xbf16>, vector<2x128xf32> -> vector<2x128xf32>
    %c0_17 = arith.constant 0 : index
    %c0_18 = arith.constant 0 : index
    %27 = vector.load %arg5[%c0_17, %c0_18] : memref<1x128xf32, #tpu.memory_space<vmem>>, vector<1x128xf32>
    %28 = vector.broadcast %27 : vector<1x128xf32> to vector<2x128xf32>
    %29 = arith.addf %26, %28 : vector<2x128xf32>
    %cst_19 = arith.constant dense<0xFF800000> : vector<2xf32>
    %30 = vector.multi_reduction <maximumf>, %29, %cst_19 [1] : vector<2x128xf32> to vector<2xf32>
    %31 = vector.shape_cast %30 : vector<2xf32> to vector<2x1xf32>
    %32 = vector.broadcast %31 : vector<2x1xf32> to vector<2x128xf32>
    %33 = arith.subf %29, %32 : vector<2x128xf32>
    %34 = math.exp %33 : vector<2x128xf32>
    %cst_20 = arith.constant dense<0.000000e+00> : vector<2xf32>
    %35 = vector.multi_reduction <add>, %34, %cst_20 [1] : vector<2x128xf32> to vector<2xf32>
    %36 = vector.shape_cast %35 : vector<2xf32> to vector<2x1xf32>
    %37 = math.log %36 : vector<2x1xf32>
    %38 = arith.addf %31, %37 : vector<2x1xf32>
    %39 = vector.broadcast %38 : vector<2x1xf32> to vector<2x128xf32>
    %40 = arith.subf %29, %39 : vector<2x128xf32>
    %c0_21 = arith.constant 0 : index
    %c0_22 = arith.constant 0 : index
    %41 = vector.load %arg6[%c0_21, %c0_22] : memref<2x128xf32, #tpu.memory_space<vmem>>, vector<2x128xf32>
    tpu.vector_store %arg6[%c0_21, %c0_22], %40 {strides = array<i32>} : memref<2x128xf32, #tpu.memory_space<vmem>>, vector<2x128xf32>,
    return
  }
  func.func @transform_0(%arg0: i32) -> (i32, i32) {
    %c0_i32 = arith.constant 0 : i32
    %c0_i32_0 = arith.constant 0 : i32
    return %arg0, %c0_i32 : i32, i32
  }
  func.func @transform_1(%arg0: i32) -> (i32, i32, i32) {
    %c0_i32 = arith.constant 0 : i32
    %c0_i32_0 = arith.constant 0 : i32
    %c0_i32_1 = arith.constant 0 : i32
    %c0_i32_2 = arith.constant 0 : i32
    return %c0_i32, %c0_i32_0, %c0_i32_1 : i32, i32, i32
  }
  func.func @transform_2(%arg0: i32) -> (i32, i32) {
    %c0_i32 = arith.constant 0 : i32
    %c0_i32_0 = arith.constant 0 : i32
    %c0_i32_1 = arith.constant 0 : i32
    return %c0_i32, %c0_i32_0 : i32, i32
  }
  func.func @transform_3(%arg0: i32) -> (i32, i32) {
    %c0_i32 = arith.constant 0 : i32
    %c0_i32_0 = arith.constant 0 : i32
    %c0_i32_1 = arith.constant 0 : i32
    return %c0_i32, %c0_i32_0 : i32, i32
  }
  func.func @transform_4(%arg0: i32) -> (i32, i32) {
    %c0_i32 = arith.constant 0 : i32
    %c0_i32_0 = arith.constant 0 : i32
    %c0_i32_1 = arith.constant 0 : i32
    return %c0_i32, %c0_i32_0 : i32, i32
  }
  func.func @transform_5(%arg0: i32) -> (i32, i32) {
    %c0_i32 = arith.constant 0 : i32
    %c0_i32_0 = arith.constant 0 : i32
    return %arg0, %c0_i32 : i32, i32
  }
}

</mosaic_0001>

<bundles_post_ra>
// kernel: tpu_custom_call.1
= control target key start
LH: loop header
LB: loop body
LE: loop exit
PB: predicated region body
PF: predicated region fallthrough
CT: control target
= control target key end

     0   :  { %10 = vsyncpa [#allocation3], 0  ;;  %s967_s0 = inlined_call_operand.hbm [shape: bf16[32,128], index: 0, kind: input, shape index: {}]   ;;  %s968_s1 = inlined_call_operand.hbm [shape: bf16[3,128,128], index: 1, kind: input, shape index: {}]   ;;  %s969_s2 = inlined_call_operand.vmem [shape: f32[1,128], index: 2, kind: input, shape index: {}]   ;;  %s970_s3 = inlined_call_operand.hbm [shape: bf16[128,128], index: 3, kind: input, shape index: {}]   ;;  %s971_s4 = inlined_call_operand.vmem [shape: f32[1,128], index: 4, kind: input, shape index: {}]   ;;  %s972_s5 = inlined_call_operand.hbm [shape: f32[2,128], index: 5, kind: output, shape index: {}]  }
   0x1   :  { %11 = vsyncpa [#allocation6], 0 }
   0x2   :  { %12 = vsyncpa [#allocation4], 0  ;;  %s911_s18 = smov [#allocation5]   ;;  %s912_s20 = smov [#allocation2]  }
   0x3   :  { %s30_s19 = sshll.u32 %s911_s18, 4  ;;  %s18_s21 = sshll.u32 %s912_s20, 4  ;;  %s31_s19 = int_to_ptr.vmem [resolvable:$true] %s30_s19  ;;  %s19_s21 = int_to_ptr.vmem [resolvable:$true] %s18_s21 }
   0x4   :  { %s833_s22 = scalar_lea.vmem %s31_s19, 3072  ;;  %p838_p1 = scmp.lt.s32.totalorder %s31_s19, %s31_s19 }
   0x5   :  { %p834_p0 = scmp.ne.s32.totalorder %s31_s19, %s833_s22  ;;  %p839_p2 = scmp.lt.s32.totalorder %s833_s22, %s833_s22 }
   0x7   :  { %p840_p3 = por %p839_p2, %p838_p1 }
   0x9   :  { %p841_p4 = pnand %p840_p3, %p834_p0 }
   0xb   :  { %844 = shalt.err (!%p841_p4)
}
   0xc   :  { %s913_s23 = smov 64   ;;  %s914_s24 = smov 4  }
   0xd   :  { %36 = dma.hbm_to_vmem [thread:$0]  %s968_s1, 3072, %s31_s19, [#allocation6], %s913_s23, %s913_s23, %s914_s24  }
   0xe   :  { %s853_s27 = scalar_lea.vmem %s19_s21, 256  ;;  %p858_p6 = scmp.lt.s32.totalorder %s19_s21, %s19_s21 }
   0xf   :  { %p854_p5 = scmp.ne.s32.totalorder %s19_s21, %s853_s27  ;;  %p859_p7 = scmp.lt.s32.totalorder %s853_s27, %s853_s27 }
  0x11   :  { %p860_p8 = por %p859_p7, %p858_p6 }
  0x13   :  { %p861_p9 = pnand %p860_p8, %p854_p5 }
  0x15   :  { %864 = shalt.err (!%p861_p9)
}
  0x16   :  { %24 = dma.hbm_to_vmem [thread:$0]  %s967_s0, 256, %s19_s21, [#allocation3], %s913_s23, %s913_s23, %s914_s24  }
  0x17   :  { %s915_s30 = smov [#allocation7]  }
  0x18   :  { %s44_s6 = sshll.u32 %s915_s30, 4  ;;  %s45_s6 = int_to_ptr.vmem [resolvable:$true] %s44_s6 }
  0x19   :  { %s873_s7 = scalar_lea.vmem %s45_s6, 1024  ;;  %p878_p11 = scmp.lt.s32.totalorder %s45_s6, %s45_s6 }
  0x1a   :  { %p874_p10 = scmp.ne.s32.totalorder %s45_s6, %s873_s7  ;;  %p879_p12 = scmp.lt.s32.totalorder %s873_s7, %s873_s7 }
  0x1c   :  { %p880_p13 = por %p879_p12, %p878_p11 }
  0x1e   :  { %p881_p0 = pnand %p880_p13, %p874_p10 }
  0x20   :  { %884 = shalt.err (!%p881_p0)
}
  0x21   :  { %50 = dma.hbm_to_vmem [thread:$0]  %s970_s3, 1024, %s45_s6, [#allocation6], %s913_s23, %s913_s23, %s914_s24  }
  0x22   :  { %905 = dma.done.wait [#allocation3], 256  }
  0x23   :  { %906 = vsyncadd [#allocation3], 4294967040 }
  0x24   :  { %907 = dma.done.wait [#allocation6], 4096  }
  0x25   :  { %908 = vsyncadd [#allocation6], 4294963200  ;;  %v787_v0 = vld [vmem:[#allocation5 + $0x38] sm:$0xff]   ;;  %v789_v2 = vld [vmem:[#allocation5 + $0x30] sm:$0xff]   ;;  %v916_v27 = vmov 0.0   ;;  %vm917_vm0 = vmmov 0  }
  0x26   :  { %v788_v1 = vld [vmem:[#allocation5 + $0x78] sm:$0xff]   ;;  %699 = vmatprep.subr.bf16.mxu0 %v787_v0  ;;  %v790_v3 = vld [vmem:[#allocation5 + $0x70] sm:$0xff]   ;;  %v791_v4 = vld [vmem:[#allocation5 + $0x28] sm:$0xff]   ;;  %vm308_vm1 = vcmask 1046528   ;;  %vm437_vm2 = vcmask 1045504   ;;  %vm501_vm3 = vcmask 1041409  }
  0x27   :  { %719 = vmatprep.subr.bf16.mxu1 %v788_v1  ;;  %700 = vmatpush3.bf16.msra.mxu0 %v787_v0  ;;  %v792_v5 = vld [vmem:[#allocation5 + $0x68] sm:$0xff]   ;;  %v793_v6 = vld [vmem:[#allocation5 + $0x20] sm:$0xff]   ;;  %v795_v8 = vld [vmem:[#allocation5 + $0x18] sm:$0xff]   ;;  %vm593_vm4 = vcmask 1041408  }
  0x28   :  { %720 = vmatpush3.bf16.msra.mxu1 %v788_v1  ;;  %701 = vmatprep.subr.bf16.mxu0 %v789_v2  ;;  %v794_v7 = vld [vmem:[#allocation5 + $0x60] sm:$0xff]   ;;  %v796_v9 = vld [vmem:[#allocation5 + $0x58] sm:$0xff]   ;;  %v797_v10 = vld [vmem:[#allocation5 + $0x10] sm:$0xff]  }
  0x29   :  { %721 = vmatprep.subr.bf16.mxu1 %v790_v3  ;;  %v803_v11 = vld [vmem:[#allocation2] sm:$0xff]   ;;  %v799_v13 = vld [vmem:[#allocation5 + $0x8] sm:$0xff]   ;;  %v801_v15 = vld [vmem:[#allocation5] sm:$0xff]  }
  0x2a   :  { %v798_v12 = vld [vmem:[#allocation5 + $0x50] sm:$0xff]   ;;  %715 = vmatprep.mubr.bf16.mxu0 %v803_v11  ;;  %735 = vmatprep.mubr.bf16.mxu1 %v803_v11  ;;  %v800_v14 = vld [vmem:[#allocation5 + $0x48] sm:$0xff]   ;;  %v802_v16 = vld [vmem:[#allocation5 + $0x40] sm:$0xff]  }
  0x2b   :  { %702 = vmatpush3.bf16.msra.mxu0 %v789_v2  ;;  %v805_v17 = vld [vmem:[#allocation5 + $0xb8] sm:$0xff]   ;;  %v806_v19 = vld [vmem:[#allocation5 + $0xb0] sm:$0xff]   ;;  %v807_v20 = vld [vmem:[#allocation5 + $0xa8] sm:$0xff]  }
  0x2c   :  { %722 = vmatpush3.bf16.msra.mxu1 %v790_v3  ;;  %703 = vmatprep.subr.bf16.mxu0 %v791_v4  ;;  %v804_v18 = vld [vmem:[#allocation2 + $0x8] sm:$0xff]   ;;  %v808_v21 = vld [vmem:[#allocation5 + $0xa0] sm:$0xff]   ;;  %v810_v23 = vld [vmem:[#allocation5 + $0x90] sm:$0xff]  }
  0x2d   :  { %723 = vmatprep.subr.bf16.mxu1 %v792_v5  ;;  %v809_v22 = vld [vmem:[#allocation5 + $0x98] sm:$0xff]   ;;  %v811_v24 = vld [vmem:[#allocation5 + $0x88] sm:$0xff]   ;;  %v812_v25 = vld [vmem:[#allocation5 + $0x80] sm:$0xff]  }
  0x2e   :  { %v813_v26 = vld [vmem:[#allocation7 + $0x38] sm:$0xff]   ;;  %v814_v28 = vld [vmem:[#allocation7 + $0x30] sm:$0xff]   ;;  %v815_v29 = vld [vmem:[#allocation7 + $0x28] sm:$0xff]  }
  0x2f   :  { %704 = vmatpush3.bf16.msra.mxu0 %v791_v4  ;;  %v816_v30 = vld [vmem:[#allocation7 + $0x20] sm:$0xff]   ;;  %v817_v31 = vld [vmem:[#allocation7 + $0x18] sm:$0xff]   ;;  %v818_v32 = vld [vmem:[#allocation7 + $0x10] sm:$0xff]  }
  0x30   :  { %724 = vmatpush3.bf16.msra.mxu1 %v792_v5  ;;  %705 = vmatprep.subr.bf16.mxu0 %v793_v6  ;;  %v819_v33 = vld [vmem:[#allocation7 + $0x8] sm:$0xff]   ;;  %v820_v34 = vld [vmem:[#allocation7] sm:$0xff]  }
  0x31   :  { %725 = vmatprep.subr.bf16.mxu1 %v794_v7 }
  0x33   :  { %706 = vmatpush3.bf16.msra.mxu0 %v793_v6 }
  0x34   :  { %726 = vmatpush3.bf16.msra.mxu1 %v794_v7  ;;  %707 = vmatprep.subr.bf16.mxu0 %v795_v8 }
  0x35   :  { %727 = vmatprep.subr.bf16.mxu1 %v796_v9 }
  0x37   :  { %708 = vmatpush3.bf16.msra.mxu0 %v795_v8  ;;  %v650_v8 = vld [vmem:[%s969_s2] ss:$0 sm:$0xff]  ;;  %s918_s2 = smov [#allocation8]  }
  0x38   :  { %728 = vmatpush3.bf16.msra.mxu1 %v796_v9  ;;  %709 = vmatprep.subr.bf16.mxu0 %v797_v10 }
  0x39   :  { %729 = vmatprep.subr.bf16.mxu1 %v798_v12 }
  0x3b   :  { %710 = vmatpush3.bf16.msra.mxu0 %v797_v10 }
  0x3c   :  { %730 = vmatpush3.bf16.msra.mxu1 %v798_v12  ;;  %711 = vmatprep.subr.bf16.mxu0 %v799_v13 }
  0x3d   :  { %731 = vmatprep.subr.bf16.mxu1 %v800_v14 }
  0x3f   :  { %712 = vmatpush3.bf16.msra.mxu0 %v799_v13 }
  0x40   :  { %732 = vmatpush3.bf16.msra.mxu1 %v800_v14  ;;  %713 = vmatprep.subr.bf16.mxu0 %v801_v15 }
  0x41   :  { %733 = vmatprep.subr.bf16.mxu1 %v802_v16 }
  0x43   :  { %714 = vmatpush3.bf16.msra.mxu0 %v801_v15 }
  0x44   :  { %734 = vmatpush3.bf16.msra.mxu1 %v802_v16  ;;  %739 = vmatprep.subr.bf16.mxu0 %v805_v17 }
  0x45   :  { %759 = vmatprep.subr.bf16.mxu1 %v916_v27 }
  0x46   :  { %716 = vmatmul.mubr.bf16.vlgmr.msra.gmra.mxu0 %v804_v18 }
  0x47   :  { %736 = vmatmul.mubr.bf16.vlgmr.msra.gmra.mxu1 %v804_v18  ;;  %740 = vmatpush3.bf16.msra.mxu0 %v805_v17 }
  0x48   :  { %741 = vmatprep.subr.bf16.mxu0 %v806_v19  ;;  %755 = vmatprep.mubr.bf16.mxu0 %v803_v11 }
  0x49   :  { %760 = vmatpush3.bf16.msra.mxu1 %v813_v26  ;;  %775 = vmatprep.mubr.msk.bf16.mxu1 %vm917_vm0, %v916_v27 }
  0x4a   :  { %761 = vmatprep.subr.bf16.mxu1 %v916_v27 }
  0x4b   :  { %742 = vmatpush3.bf16.msra.mxu0 %v806_v19 }
  0x4c   :  { %743 = vmatprep.subr.bf16.mxu0 %v807_v20 }
  0x4d   :  { %762 = vmatpush3.bf16.msra.mxu1 %v814_v28 }
  0x4e   :  { %763 = vmatprep.subr.bf16.mxu1 %v916_v27 }
  0x4f   :  { %744 = vmatpush3.bf16.msra.mxu0 %v807_v20 }
  0x50   :  { %745 = vmatprep.subr.bf16.mxu0 %v808_v21 }
  0x51   :  { %764 = vmatpush3.bf16.msra.mxu1 %v815_v29 }
  0x52   :  { %765 = vmatprep.subr.bf16.mxu1 %v916_v27 }
  0x53   :  { %746 = vmatpush3.bf16.msra.mxu0 %v808_v21 }
  0x54   :  { %747 = vmatprep.subr.bf16.mxu0 %v809_v22 }
  0x55   :  { %766 = vmatpush3.bf16.msra.mxu1 %v816_v30 }
  0x56   :  { %767 = vmatprep.subr.bf16.mxu1 %v916_v27 }
  0x57   :  { %748 = vmatpush3.bf16.msra.mxu0 %v809_v22 }
  0x58   :  { %749 = vmatprep.subr.bf16.mxu0 %v810_v23 }
  0x59   :  { %768 = vmatpush3.bf16.msra.mxu1 %v817_v31 }
  0x5a   :  { %769 = vmatprep.subr.bf16.mxu1 %v916_v27 }
  0x5b   :  { %750 = vmatpush3.bf16.msra.mxu0 %v810_v23  ;;  %v651_v23 = vld [vmem:[%s971_s4] ss:$0 sm:$0xff]  ;;  %s614_s4 = sshll.u32 %s918_s2, 4  ;;  %s615_s4 = int_to_ptr.vmem [resolvable:$true] %s614_s4 }
  0x5c   :  { %751 = vmatprep.subr.bf16.mxu0 %v811_v24  ;;  %s885_s11 = scalar_lea.vmem %s615_s4, 32  ;;  %p890_p2 = scmp.lt.s32.totalorder %s615_s4, %s615_s4 }
  0x5d   :  { %770 = vmatpush3.bf16.msra.mxu1 %v818_v32  ;;  %p886_p1 = scmp.ne.s32.totalorder %s615_s4, %s885_s11  ;;  %p891_p3 = scmp.lt.s32.totalorder %s885_s11, %s885_s11 }
  0x5e   :  { %771 = vmatprep.subr.bf16.mxu1 %v916_v27 }
  0x5f   :  { %752 = vmatpush3.bf16.msra.mxu0 %v811_v24  ;;  %p892_p4 = por %p891_p3, %p890_p2 }
  0x60   :  { %753 = vmatprep.subr.bf16.mxu0 %v812_v25 }
  0x61   :  { %772 = vmatpush3.bf16.msra.mxu1 %v819_v33  ;;  %p893_p5 = pnand %p892_p4, %p886_p1 }
  0x62   :  { %773 = vmatprep.subr.bf16.mxu1 %v916_v27 }
  0x63   :  { %754 = vmatpush3.bf16.msra.mxu0 %v812_v25 }
  0x65   :  { %774 = vmatpush3.bf16.msra.mxu1 %v820_v34 }
  0x66   :  { %756 = vmatmul.mubr.bf16.vlgmr.msra.gmra.mxu0 %v804_v18 }
 0x106   :  { %v717_v35 = vpop.f32.mrf.mxu0 }
 0x107   :  { %v737_v39 = vpop.f32.mrf.mxu1 }
 0x108   :  { %v177_v36 = vpop.f32.mrf.mxu0  ;;  %v312_v43 = vrot.slane %v737_v39, 1 }
 0x109   :  { %v289_v40 = vpop.f32.mrf.mxu1 }
 0x10a   :  { %v718_v37 = vpop.f32.mrf.mxu0  ;;  %v309_v46 = vrot.slane %v289_v40, 1 }
 0x10b   :  { %v738_v41 = vpop.f32.mrf.mxu1 }
 0x10c   :  { %v180_v38 = vpop.f32.mrf.mxu0  ;;  %v313_v44 = vrot.slane %v738_v41, 1 }
 0x10d   :  { %v292_v42 = vpop.f32.mrf.mxu1 }
 0x10e   :  { %v310_v47 = vrot.slane %v292_v42, 1  ;;  %v314_v49 = vsel %vm308_vm1, %v312_v43, %v313_v44 }
 0x10f   :  { %v318_v54 = vadd.f32 %v717_v35, %v314_v49 }
 0x110   :  { %v311_v51 = vsel %vm308_vm1, %v309_v46, %v310_v47 }
 0x111   :  { %v317_v59 = vadd.f32 %v311_v51, %v177_v36 }
 0x126   :  { %v757_v45 = vpop.f32.mrf.mxu0 }
 0x127   :  { %v441_v52 = vrot.slane %v757_v45, 2 }
 0x128   :  { %v418_v48 = vpop.f32.mrf.mxu0 }
 0x129   :  { %v438_v56 = vrot.slane %v418_v48, 2 }
 0x12a   :  { %v758_v50 = vpop.f32.mrf.mxu0 }
 0x12b   :  { %v442_v53 = vrot.slane %v758_v50, 2 }
 0x12c   :  { %v421_v55 = vpop.f32.mrf.mxu0 }
 0x12d   :  { %v443_v57 = vsel %vm437_vm2, %v441_v52, %v442_v53  ;;  %v439_v58 = vrot.slane %v421_v55, 2 }
 0x12e   :  { %v447_v60 = vadd.f32 %v443_v57, %v318_v54 }
 0x12f   :  { %v440_v61 = vsel %vm437_vm2, %v438_v56, %v439_v58 }
 0x130   :  { %v454_v62 = vrot.slane %v447_v60, 4  ;;  %v446_v63 = vadd.f32 %v440_v61, %v317_v59 }
 0x132   :  { %v455_v0 = vmax.f32 %v447_v60, %v454_v62  ;;  %v448_v1 = vrot.slane %v446_v63, 4 }
 0x134   :  { %v456_v2 = vrot.slane %v455_v0, 2  ;;  %v449_v3 = vmax.f32 %v446_v63, %v448_v1 }
 0x136   :  { %v457_v4 = vmax.f32 %v455_v0, %v456_v2  ;;  %v450_v5 = vrot.slane %v449_v3, 2 }
 0x138   :  { %v458_v6 = vrot.slane %v457_v4, 1  ;;  %v451_v7 = vmax.f32 %v449_v3, %v450_v5 }
 0x13a   :  { %v459_v9 = vmax.f32 %v457_v4, %v458_v6  ;;  %v452_v10 = vrot.slane %v451_v7, 1 }
 0x13c   :  { %v468_v11 = vadd.f32 %v650_v8, %v459_v9  ;;  %v453_v12 = vmax.f32 %v451_v7, %v452_v10 }
 0x13e   :  { %v467_v13 = vadd.f32 %v650_v8, %v453_v12  ;;  %v470_v14 = vmax.f32 %v468_v11, 0.0 }
 0x140   :  { %v469_v15 = vmax.f32 %v467_v13, 0.0  ;;  %v472_v16 = vpack.c.bf16 %v470_v14, %v470_v14 }
 0x142   :  { %v471_v17 = vpack.c.bf16 %v469_v15, %v469_v15  ;;  %v499_v18 = vunpack.c.l.b16 %v472_v16 }
 0x144   :  { %v498_v19 = vunpack.c.l.b16 %v471_v17  ;;  %v500_v20 = vrot.slane %v499_v18, 7 }
 0x146   :  { %v502_v21 = vsel %vm501_vm3, %v500_v20, %v498_v19 }
 0x147   :  { %v503_v22 = vpack.c.b16 %v502_v21, %v502_v21 }
 0x149   :  { %776 = vmatmul.mubr.bf16.vlgmr.msra.gmra.mxu1 %v503_v22 }
 0x209   :  { %v587_v24 = vpop.f32.mrf.mxu1 }
 0x20a   :  { %v588_v25 = vadd.f32 %v651_v23, %v587_v24 }
 0x20b   :  { %v777_v26 = vpop.f32.mrf.mxu1 }
 0x20c   :  { %v594_v27 = vsel %vm593_vm4, %v588_v25, -inf }
 0x20d   :  { %595 = vmax.xlane.f32.xlu0 %v594_v27  ;;  %v590_v28 = vpop.f32.mrf.mxu1 }
 0x20f   :  { %v778_v29 = vpop.f32.mrf.mxu1 }
 0x296   :  { %v596_v30 = vpop.xlane.xlu0 %595 }
 0x297   :  { %v597_v31 = vsub.f32 %v588_v25, %v596_v30 }
 0x299   :  { %v598_v32 = vmul.f32 1.442695, %v597_v31 }
 0x29b   :  { %821 = vpow2.f32 %v598_v32 }
 0x2a8   :  { %v822_v33 = vpop.eup %821 }
 0x2a9   :  { %v600_v34 = vsel %vm593_vm4, %v822_v33, 0.0 }
 0x2aa   :  { %601 = vadd.xlane.f32.xlu0 %v600_v34 }
 0x333   :  { %v602_v35 = vpop.xlane.xlu0 %601 }
 0x334   :  { %823 = vlog2.f32 %v602_v35 }
 0x341   :  { %v824_v36 = vpop.eup %823 }
 0x342   :  { %v604_v37 = vmul.f32 0.6931472, %v824_v36 }
 0x344   :  { %v605_v38 = vadd.f32 %v604_v37, %v596_v30 }
 0x346   :  { %v606_v39 = vsub.f32 %v588_v25, %v605_v38 }
 0x348   :  { %607 = vst [vmem:[#allocation8] sm:$0x3] %v606_v39 }
 0x349   :  { %896 = shalt.err (!%p893_p5)
}
 0x34a   :  { %617 = dma.vmem_to_hbm [thread:$0]  %s615_s4, 32, %s972_s5, [#allocation4]  }
 0x34b   :  { %909 = dma.done.wait [#allocation4], 32  }
 0x34c   :  { %910 = vsyncadd [#allocation4], 4294967264 }
 0x34d   :  { %621 = vsyncpa [#allocation3], 1 }
 0x34e   :  { %622 = vsyncpa [#allocation6], 1 }
 0x34f   :  { %623 = vsyncpa [#allocation4], 1 }

</bundles_post_ra>
